<compile_context>
chip_gen: v5e
topology: v5e:2x2
jax: 0.10.0
libtpu: 0.0.40
codegen_flags: <defaults>
</compile_context>

<pallas_src>
import jax
import jax.numpy as jnp
from jax.experimental import pallas as pl
from jax.experimental.pallas import tpu as pltpu

EPS = 1e-5  # torch.nn.BatchNorm1d default eps


# ---------------------------------------------------------------------------
# Kernel
# ---------------------------------------------------------------------------
def _batchnorm(x, gamma, beta):
    """BatchNorm1d training-mode: batch (sublane-axis) stats, biased variance."""
    mean = jnp.mean(x, axis=0, keepdims=True)            # (1, F)  XLU reduce
    d = x - mean
    var = jnp.mean(d * d, axis=0, keepdims=True)         # biased variance
    return d * jax.lax.rsqrt(var + EPS) * gamma + beta   # rsqrt -> EUP


def resblock_bn_kernel(x_ref, w1_ref, w2_ref, vec_ref, o_ref):
    """Fused ResBlockBatchNorm forward (all operands resident in VMEM).

    vec_ref is a packed (8, W) slab:
      row 0: gamma1 (D)   row 1: beta1 (D)   row 2: b1 (Hp, zero-padded)
      row 3: b2 (D)       row 4: gamma2 (D)  row 5: beta2 (D)
      rows 6-7: zero padding (sublane alignment)
    """
    x = x_ref[...].astype(jnp.float32)                   # (B, D)
    D = x.shape[1]
    Hp = w1_ref.shape[1]

    vec = vec_ref[...].astype(jnp.float32)               # (8, W)
    g1, be1 = vec[0:1, :D], vec[1:2, :D]
    b1 = vec[2:3, :Hp]
    b2, g2, be2 = vec[3:4, :D], vec[4:5, :D], vec[5:6, :D]

    # norm_input
    xn = _batchnorm(x, g1, be1)

    # linear_1 + ReLU  (MXU matmul, f32 accumulate)
    z = jnp.dot(xn, w1_ref[...], preferred_element_type=jnp.float32) + b1
    z = jnp.maximum(z, 0.0)

    # linear_2
    z = jnp.dot(z, w2_ref[...], preferred_element_type=jnp.float32) + b2

    # norm2 + residual (residual is the *normalized* input, per the PyTorch code)
    o_ref[...] = (_batchnorm(z, g2, be2) + xn).astype(o_ref.dtype)


# ---------------------------------------------------------------------------
# Host-side parameter prep (done once) + jitted forward
# ---------------------------------------------------------------------------
def _round_up(n, m):
    return ((n + m - 1) // m) * m


def pack_resblock_params(gamma1, beta1, w1, b1, w2, b2, gamma2, beta2):
    """Pad the hidden dim to a lane-dense multiple of 128 (exact zero padding)
    and pack the six per-feature vectors into one (8, W) slab."""
    D, H = w1.shape
    Hp = _round_up(max(H, 128), 128)
    W = max(D, Hp)

    w1p = jnp.pad(jnp.asarray(w1, jnp.float32), ((0, 0), (0, Hp - H)))
    w2p = jnp.pad(jnp.asarray(w2, jnp.float32), ((0, Hp - H), (0, 0)))

    def row(v):
        v = jnp.asarray(v, jnp.float32).reshape(1, -1)
        return jnp.pad(v, ((0, 0), (0, W - v.shape[1])))

    slab = jnp.concatenate(
        [row(gamma1), row(beta1), row(b1), row(b2), row(gamma2), row(beta2),
         jnp.zeros((2, W), jnp.float32)],
        axis=0,
    )
    return w1p, w2p, slab


@jax.jit
def resblock_batchnorm_forward(x, w1p, w2p, slab):
    B, D = x.shape
    vmem = pl.BlockSpec(memory_space=pltpu.MemorySpace.VMEM)
    return pl.pallas_call(
        resblock_bn_kernel,
        out_shape=jax.ShapeDtypeStruct((B, D), x.dtype),
        in_specs=[vmem, vmem, vmem, vmem],
        out_specs=vmem,
    )(x, w1p, w2p, slab)


# ---------------------------------------------------------------------------
# Pure-JAX reference (HIGHEST-precision matmuls) for correctness checking
# ---------------------------------------------------------------------------
def ref_forward(x, gamma1, beta1, w1, b1, w2, b2, gamma2, beta2):
    hi = jax.lax.Precision.HIGHEST

    def bn(v, g, b):
        m = v.mean(0, keepdims=True)
        var = ((v - m) ** 2).mean(0, keepdims=True)
        return (v - m) / jnp.sqrt(var + EPS) * g + b

    xn = bn(x, gamma1, beta1)
    z = jnp.maximum(jnp.dot(xn, w1, precision=hi) + b1, 0.0)
    z = jnp.dot(z, w2, precision=hi) + b2
    return bn(z, gamma2, beta2) + xn


# ---------------------------------------------------------------------------
if __name__ == "__main__":
    key = jax.random.PRNGKey(0)
    kx, kw1, kb1, kw2, kb2, kg1, kbe1, kg2, kbe2 = jax.random.split(key, 9)

    # Small shapes consistent with the module: x is (batch, ninput).
    # NHIDDEN=96 deliberately exercises the pad-to-128 path.
    B, NINPUT, NHIDDEN = 8, 128, 96

    # nn.Linear default init range U(-1/sqrt(fan_in), 1/sqrt(fan_in)); weights
    # stored as (in, out) == PyTorch weight.T
    bnd1 = 1.0 / (NINPUT ** 0.5)
    w1 = jax.random.uniform(kw1, (NINPUT, NHIDDEN), jnp.float32, -bnd1, bnd1)
    b1 = jax.random.uniform(kb1, (NHIDDEN,), jnp.float32, -bnd1, bnd1)
    bnd2 = 1.0 / (NHIDDEN ** 0.5)
    w2 = jax.random.uniform(kw2, (NHIDDEN, NINPUT), jnp.float32, -bnd2, bnd2)
    b2 = jax.random.uniform(kb2, (NINPUT,), jnp.float32, -bnd2, bnd2)

    # Non-trivial BatchNorm affine params so the check is meaningful.
    gamma1 = 1.0 + 0.1 * jax.random.normal(kg1, (NINPUT,), jnp.float32)
    beta1 = 0.1 * jax.random.normal(kbe1, (NINPUT,), jnp.float32)
    gamma2 = 1.0 + 0.1 * jax.random.normal(kg2, (NINPUT,), jnp.float32)
    beta2 = 0.1 * jax.random.normal(kbe2, (NINPUT,), jnp.float32)

    x = jax.random.normal(kx, (B, NINPUT), jnp.float32)

    # One-time param packing, then the fused single-call forward.
    w1p, w2p, slab = pack_resblock_params(
        gamma1, beta1, w1, b1, w2, b2, gamma2, beta2)

    out = resblock_batchnorm_forward(x, w1p, w2p, slab)
    out = jax.block_until_ready(out)

    ref = ref_forward(x, gamma1, beta1, w1, b1, w2, b2, gamma2, beta2)
    assert out.shape == (B, NINPUT), out.shape
    # Outputs are O(1) after BatchNorm; 1e-2 covers possible bf16-pass MXU
    # rounding of the f32 matmuls while still catching any semantic bug
    # (wrong residual / missing ReLU / wrong stats axis are O(1) errors).
    assert jnp.allclose(out, ref, atol=1e-2, rtol=1e-2), \
        float(jnp.max(jnp.abs(out - ref)))

    print("KERNEL_OK")
</pallas_src>

<mosaic_0001>
module attributes {stable_mosaic.version = 11 : i64} {
  func.func @resblock_bn_kernel(%arg0: memref<8x128xf32, #tpu.memory_space<vmem>>, %arg1: memref<128x128xf32, #tpu.memory_space<vmem>>, %arg2: memref<128x128xf32, #tpu.memory_space<vmem>>, %arg3: memref<8x128xf32, #tpu.memory_space<vmem>>, %arg4: memref<8x128xf32, #tpu.memory_space<vmem>>) attributes {dimension_semantics = [], scalar_prefetch = 0 : i64, scratch_operands = 0 : i64, tpu.core_type = #tpu.core_type<tc>} {
    %c0 = arith.constant 0 : index
    %c0_0 = arith.constant 0 : index
    %0 = vector.load %arg0[%c0, %c0_0] : memref<8x128xf32, #tpu.memory_space<vmem>>, vector<8x128xf32>
    %c0_1 = arith.constant 0 : index
    %c0_2 = arith.constant 0 : index
    %1 = vector.load %arg3[%c0_1, %c0_2] : memref<8x128xf32, #tpu.memory_space<vmem>>, vector<8x128xf32>
    %2 = vector.extract_strided_slice %1 {offsets = [0, 0], sizes = [1, 128], strides = [1, 1]} : vector<8x128xf32> to vector<1x128xf32>
    %3 = vector.extract_strided_slice %1 {offsets = [1, 0], sizes = [1, 128], strides = [1, 1]} : vector<8x128xf32> to vector<1x128xf32>
    %4 = vector.extract_strided_slice %1 {offsets = [2, 0], sizes = [1, 128], strides = [1, 1]} : vector<8x128xf32> to vector<1x128xf32>
    %5 = vector.extract_strided_slice %1 {offsets = [3, 0], sizes = [1, 128], strides = [1, 1]} : vector<8x128xf32> to vector<1x128xf32>
    %6 = vector.extract_strided_slice %1 {offsets = [4, 0], sizes = [1, 128], strides = [1, 1]} : vector<8x128xf32> to vector<1x128xf32>
    %7 = vector.extract_strided_slice %1 {offsets = [5, 0], sizes = [1, 128], strides = [1, 1]} : vector<8x128xf32> to vector<1x128xf32>
    %cst = arith.constant dense<0.000000e+00> : vector<128xf32>
    %8 = vector.multi_reduction <add>, %0, %cst [0] : vector<8x128xf32> to vector<128xf32>
    %9 = vector.shape_cast %8 : vector<128xf32> to vector<1x128xf32>
    %cst_3 = arith.constant 8.000000e+00 : f32
    %10 = vector.broadcast %cst_3 : f32 to vector<1x128xf32>
    %11 = arith.divf %9, %10 : vector<1x128xf32>
    %12 = vector.broadcast %11 : vector<1x128xf32> to vector<8x128xf32>
    %13 = arith.subf %0, %12 : vector<8x128xf32>
    %14 = arith.mulf %13, %13 : vector<8x128xf32>
    %cst_4 = arith.constant dense<0.000000e+00> : vector<128xf32>
    %15 = vector.multi_reduction <add>, %14, %cst_4 [0] : vector<8x128xf32> to vector<128xf32>
    %16 = vector.shape_cast %15 : vector<128xf32> to vector<1x128xf32>
    %cst_5 = arith.constant 8.000000e+00 : f32
    %17 = vector.broadcast %cst_5 : f32 to vector<1x128xf32>
    %18 = arith.divf %16, %17 : vector<1x128xf32>
    %cst_6 = arith.constant 9.99999974E-6 : f32
    %19 = vector.broadcast %cst_6 : f32 to vector<1x128xf32>
    %20 = arith.addf %18, %19 : vector<1x128xf32>
    %21 = math.rsqrt %20 : vector<1x128xf32>
    %22 = vector.broadcast %21 : vector<1x128xf32> to vector<8x128xf32>
    %23 = arith.mulf %13, %22 : vector<8x128xf32>
    %24 = vector.broadcast %2 : vector<1x128xf32> to vector<8x128xf32>
    %25 = arith.mulf %23, %24 : vector<8x128xf32>
    %26 = vector.broadcast %3 : vector<1x128xf32> to vector<8x128xf32>
    %27 = arith.addf %25, %26 : vector<8x128xf32>
    %c0_7 = arith.constant 0 : index
    %c0_8 = arith.constant 0 : index
    %28 = vector.load %arg1[%c0_7, %c0_8] : memref<128x128xf32, #tpu.memory_space<vmem>>, vector<128x128xf32>
    %cst_9 = arith.constant dense<0.000000e+00> : vector<8x128xf32>
    %29 = tpu.matmul %27, %28, %cst_9 {dimension_numbers = #tpu.dot_dimension_numbers<[1], [0], [0], [1], [0, 0, 1, 1], [], []>} : vector<8x128xf32>, vector<128x128xf32>, vector<8x128xf32> -> vector<8x128xf32>
    %30 = vector.broadcast %4 : vector<1x128xf32> to vector<8x128xf32>
    %31 = arith.addf %29, %30 : vector<8x128xf32>
    %cst_10 = arith.constant 0.000000e+00 : f32
    %32 = vector.broadcast %cst_10 : f32 to vector<8x128xf32>
    %33 = arith.maximumf %31, %32 : vector<8x128xf32>
    %c0_11 = arith.constant 0 : index
    %c0_12 = arith.constant 0 : index
    %34 = vector.load %arg2[%c0_11, %c0_12] : memref<128x128xf32, #tpu.memory_space<vmem>>, vector<128x128xf32>
    %cst_13 = arith.constant dense<0.000000e+00> : vector<8x128xf32>
    %35 = tpu.matmul %33, %34, %cst_13 {dimension_numbers = #tpu.dot_dimension_numbers<[1], [0], [0], [1], [0, 0, 1, 1], [], []>} : vector<8x128xf32>, vector<128x128xf32>, vector<8x128xf32> -> vector<8x128xf32>
    %36 = vector.broadcast %5 : vector<1x128xf32> to vector<8x128xf32>
    %37 = arith.addf %35, %36 : vector<8x128xf32>
    %cst_14 = arith.constant dense<0.000000e+00> : vector<128xf32>
    %38 = vector.multi_reduction <add>, %37, %cst_14 [0] : vector<8x128xf32> to vector<128xf32>
    %39 = vector.shape_cast %38 : vector<128xf32> to vector<1x128xf32>
    %cst_15 = arith.constant 8.000000e+00 : f32
    %40 = vector.broadcast %cst_15 : f32 to vector<1x128xf32>
    %41 = arith.divf %39, %40 : vector<1x128xf32>
    %42 = vector.broadcast %41 : vector<1x128xf32> to vector<8x128xf32>
    %43 = arith.subf %37, %42 : vector<8x128xf32>
    %44 = arith.mulf %43, %43 : vector<8x128xf32>
    %cst_16 = arith.constant dense<0.000000e+00> : vector<128xf32>
    %45 = vector.multi_reduction <add>, %44, %cst_16 [0] : vector<8x128xf32> to vector<128xf32>
    %46 = vector.shape_cast %45 : vector<128xf32> to vector<1x128xf32>
    %cst_17 = arith.constant 8.000000e+00 : f32
    %47 = vector.broadcast %cst_17 : f32 to vector<1x128xf32>
    %48 = arith.divf %46, %47 : vector<1x128xf32>
    %cst_18 = arith.constant 9.99999974E-6 : f32
    %49 = vector.broadcast %cst_18 : f32 to vector<1x128xf32>
    %50 = arith.addf %48, %49 : vector<1x128xf32>
    %51 = math.rsqrt %50 : vector<1x128xf32>
    %52 = vector.broadcast %51 : vector<1x128xf32> to vector<8x128xf32>
    %53 = arith.mulf %43, %52 : vector<8x128xf32>
    %54 = vector.broadcast %6 : vector<1x128xf32> to vector<8x128xf32>
    %55 = arith.mulf %53, %54 : vector<8x128xf32>
    %56 = vector.broadcast %7 : vector<1x128xf32> to vector<8x128xf32>
    %57 = arith.addf %55, %56 : vector<8x128xf32>
    %58 = arith.addf %57, %27 : vector<8x128xf32>
    %c0_19 = arith.constant 0 : index
    %c0_20 = arith.constant 0 : index
    %59 = vector.load %arg4[%c0_19, %c0_20] : memref<8x128xf32, #tpu.memory_space<vmem>>, vector<8x128xf32>
    tpu.vector_store %arg4[%c0_19, %c0_20], %58 {strides = array<i32>} : memref<8x128xf32, #tpu.memory_space<vmem>>, vector<8x128xf32>,
    return
  }
}

</mosaic_0001>

<bundles_post_ra>
// kernel: resblock_batchnorm_forward.1
= control target key start
LH: loop header
LB: loop body
LE: loop exit
PB: predicated region body
PF: predicated region fallthrough
CT: control target
= control target key end

     0   :  { %9 = vsyncpa [#allocation3], 0  ;;  %s450_s0 = inlined_call_operand.hbm [shape: f32[8,128], index: 0, kind: input, shape index: {}]   ;;  %s451_s1 = inlined_call_operand.hbm [shape: f32[128,128], index: 1, kind: input, shape index: {}]   ;;  %s452_s2 = inlined_call_operand.hbm [shape: f32[128,128], index: 2, kind: input, shape index: {}]   ;;  %s453_s3 = inlined_call_operand.hbm [shape: f32[8,128], index: 3, kind: input, shape index: {}]   ;;  %s454_s4 = inlined_call_operand.hbm [shape: f32[8,128], index: 4, kind: output, shape index: {}]  }
   0x1   :  { %10 = vsyncpa [#allocation6], 0 }
   0x2   :  { %11 = vsyncpa [#allocation9], 0  ;;  %s28_s17 = sshll.u32 %s451_s1, 4  ;;  %s29_s17 = int_to_ptr.hbm [resolvable:$true] %s28_s17 }
   0x3   :  { %12 = vsyncpa [#allocation4], 0  ;;  %s388_s18 = smov [#allocation5]   ;;  %s18_s22 = sshll.u32 %s450_s0, 4  ;;  %s19_s22 = int_to_ptr.hbm [resolvable:$true] %s18_s22 }
   0x4   :  { %s30_s19 = sshll.u32 %s388_s18, 4  ;;  %s389_s23 = smov 128   ;;  %s31_s19 = int_to_ptr.vmem [resolvable:$true] %s30_s19 }
   0x5   :  { %s390_s24 = smov 8   ;;  %s391_s25 = smov [#allocation2]  }
   0x6   :  { %36 = dma.hbm_to_vmem [thread:$0]  %s29_s17, 2048, %s31_s19, [#allocation6], %s389_s23, %s389_s23, %s390_s24  }
   0x7   :  { %s20_s26 = sshll.u32 %s391_s25, 4  ;;  %s41_s29 = sshll.u32 %s452_s2, 4  ;;  %s21_s26 = int_to_ptr.vmem [resolvable:$true] %s20_s26  ;;  %s42_s29 = int_to_ptr.hbm [resolvable:$true] %s41_s29 }
   0x8   :  { %23 = dma.hbm_to_vmem [thread:$0]  %s19_s22, 128, %s21_s26, [#allocation3]  }
   0x9   :  { %s55_s5 = sshll.u32 %s453_s3, 4  ;;  %s392_s6 = smov [#allocation7]   ;;  %s56_s5 = int_to_ptr.hbm [resolvable:$true] %s55_s5 }
   0xa   :  { %s43_s7 = sshll.u32 %s392_s6, 4  ;;  %s393_s0 = smov [#allocation8]   ;;  %s44_s7 = int_to_ptr.vmem [resolvable:$true] %s43_s7 }
   0xb   :  { %49 = dma.hbm_to_vmem [thread:$0]  %s42_s29, 2048, %s44_s7, [#allocation6], %s389_s23, %s389_s23, %s390_s24  }
   0xc   :  { %s57_s8 = sshll.u32 %s393_s0, 4  ;;  %s58_s8 = int_to_ptr.vmem [resolvable:$true] %s57_s8 }
   0xd   :  { %60 = dma.hbm_to_vmem [thread:$0]  %s56_s5, 128, %s58_s8, [#allocation9]  }
   0xe   :  { %380 = dma.done.wait [#allocation3], 128  }
   0xf   :  { %381 = vsyncadd [#allocation3], 4294967168 }
  0x10   :  { %382 = dma.done.wait [#allocation6], 4096  }
  0x11   :  { %383 = vsyncadd [#allocation6], 4294963200 }
  0x12   :  { %384 = dma.done.wait [#allocation9], 128  }
  0x13   :  { %385 = vsyncadd [#allocation9], 4294967168  ;;  %v394_v0 = vmov 8.0   ;;  %v133_v2 = vld [vmem:[#allocation5 + $0x78] sm:$0xff]  ;;  %v132_v3 = vld [vmem:[#allocation5 + $0x70] sm:$0xff]  ;;  %s395_s2 = smov [#allocation10]  }
  0x14   :  { %254 = vrcp.f32 %v394_v0  ;;  %135 = vmatpush.msra.mxu0 %v133_v2  ;;  %v131_v5 = vld [vmem:[#allocation5 + $0x68] sm:$0xff]  ;;  %v130_v7 = vld [vmem:[#allocation5 + $0x60] sm:$0xff]  ;;  %v77_v8 = vld [vmem:[#allocation2] sm:$0xff]  ;;  %s232_s3 = sshll.u32 %s395_s2, 4  ;;  %s234_s11 = sshll.u32 %s454_s4, 4  ;;  %s233_s3 = int_to_ptr.vmem [resolvable:$true] %s232_s3  ;;  %s235_s11 = int_to_ptr.hbm [resolvable:$true] %s234_s11 }
  0x15   :  { %v129_v9 = vld [vmem:[#allocation5 + $0x58] sm:$0xff]  ;;  %v79_v10 = vrot.slane %v77_v8, 4  ;;  %v128_v12 = vld [vmem:[#allocation5 + $0x50] sm:$0xff]  ;;  %v127_v14 = vld [vmem:[#allocation5 + $0x48] sm:$0xff] }
  0x16   :  { %136 = vmatpush.msra.mxu0 %v132_v3  ;;  %v126_v17 = vld [vmem:[#allocation5 + $0x40] sm:$0xff]  ;;  %v125_v19 = vld [vmem:[#allocation5 + $0x38] sm:$0xff]  ;;  %v124_v22 = vld [vmem:[#allocation5 + $0x30] sm:$0xff] }
  0x17   :  { %v80_v13 = vadd.f32 %v79_v10, %v77_v8  ;;  %v123_v24 = vld [vmem:[#allocation5 + $0x28] sm:$0xff]  ;;  %v122_v26 = vld [vmem:[#allocation5 + $0x20] sm:$0xff]  ;;  %v121_v28 = vld [vmem:[#allocation5 + $0x18] sm:$0xff] }
  0x18   :  { %137 = vmatpush.msra.mxu0 %v131_v5  ;;  %v120_v30 = vld [vmem:[#allocation5 + $0x10] sm:$0xff]  ;;  %v119_v32 = vld [vmem:[#allocation5 + $0x8] sm:$0xff]  ;;  %v118_v34 = vld [vmem:[#allocation5] sm:$0xff] }
  0x19   :  { %v81_v15 = vrot.slane %v80_v13, 2  ;;  %v171_v38 = vld [vmem:[#allocation7 + $0x78] sm:$0xff]  ;;  %v170_v39 = vld [vmem:[#allocation7 + $0x70] sm:$0xff]  ;;  %v169_v41 = vld [vmem:[#allocation7 + $0x68] sm:$0xff] }
  0x1a   :  { %v255_v1 = vpop.eup %254  ;;  %138 = vmatpush.msra.mxu0 %v130_v7  ;;  %173 = vmatpush.msra.mxu1 %v171_v38  ;;  %v168_v43 = vld [vmem:[#allocation7 + $0x60] sm:$0xff]  ;;  %v167_v45 = vld [vmem:[#allocation7 + $0x58] sm:$0xff]  ;;  %v166_v46 = vld [vmem:[#allocation7 + $0x50] sm:$0xff] }
  0x1b   :  { %v86_v4 = vmul.f32 8.0, %v255_v1  ;;  %v82_v18 = vadd.f32 %v81_v15, %v80_v13  ;;  %vm90_vm0 = vweird.f32 %v255_v1  ;;  %v165_v47 = vld [vmem:[#allocation7 + $0x48] sm:$0xff]  ;;  %v164_v48 = vld [vmem:[#allocation7 + $0x40] sm:$0xff]  ;;  %v163_v50 = vld [vmem:[#allocation7 + $0x38] sm:$0xff] }
  0x1c   :  { %139 = vmatpush.msra.mxu0 %v129_v9  ;;  %174 = vmatpush.msra.mxu1 %v170_v39  ;;  %v162_v52 = vld [vmem:[#allocation7 + $0x30] sm:$0xff]  ;;  %v161_v54 = vld [vmem:[#allocation7 + $0x28] sm:$0xff]  ;;  %v160_v56 = vld [vmem:[#allocation7 + $0x20] sm:$0xff] }
  0x1d   :  { %v87_v6 = vsub.f32 1.0, %v86_v4  ;;  %v83_v20 = vrot.slane %v82_v18, 1  ;;  %v437_v57 = vld [vmem:[#allocation8] sm:$0xff]  ;;  %v159_v59 = vld [vmem:[#allocation7 + $0x18] sm:$0xff]  ;;  %v158_v3 = vld [vmem:[#allocation7 + $0x10] sm:$0xff] }
  0x1e   :  { %140 = vmatpush.msra.mxu0 %v128_v12  ;;  %175 = vmatpush.msra.mxu1 %v169_v41  ;;  %v114_v61 = vperm.slane %v437_v57, 0  ;;  %v116_v0 = vperm.slane %v437_v57, 1  ;;  %v157_v4 = vld [vmem:[#allocation7 + $0x8] sm:$0xff]  ;;  %v156_v5 = vld [vmem:[#allocation7] sm:$0xff]  ;;  %v172_v10 = vperm.slane %v437_v57, 3 }
  0x1f   :  { %v88_v11 = vmul.f32 %v255_v1, %v87_v6  ;;  %v84_v23 = vadd.f32 %v83_v20, %v82_v18  ;;  %v134_v6 = vperm.slane %v437_v57, 2 }
  0x20   :  { %141 = vmatpush.msra.mxu0 %v127_v14  ;;  %176 = vmatpush.msra.mxu1 %v168_v43 }
  0x21   :  { %v89_v16 = vadd.f32 %v255_v1, %v88_v11 }
  0x22   :  { %142 = vmatpush.msra.mxu0 %v126_v17  ;;  %177 = vmatpush.msra.mxu1 %v167_v45 }
  0x23   :  { %v433_v21 = vsel %vm90_vm0, %v255_v1, %v89_v16 }
  0x24   :  { %143 = vmatpush.msra.mxu0 %v125_v19  ;;  %v92_v25 = vmul.f32 %v433_v21, %v84_v23  ;;  %178 = vmatpush.msra.mxu1 %v166_v46 }
  0x26   :  { %144 = vmatpush.msra.mxu0 %v124_v22  ;;  %v93_v27 = vsub.f32 %v77_v8, %v92_v25  ;;  %179 = vmatpush.msra.mxu1 %v165_v47 }
  0x28   :  { %145 = vmatpush.msra.mxu0 %v123_v24  ;;  %v94_v29 = vmul.f32 %v93_v27, %v93_v27  ;;  %180 = vmatpush.msra.mxu1 %v164_v48 }
  0x2a   :  { %146 = vmatpush.msra.mxu0 %v122_v26  ;;  %v95_v31 = vrot.slane %v94_v29, 4  ;;  %181 = vmatpush.msra.mxu1 %v163_v50 }
  0x2c   :  { %147 = vmatpush.msra.mxu0 %v121_v28  ;;  %v96_v33 = vadd.f32 %v95_v31, %v94_v29  ;;  %182 = vmatpush.msra.mxu1 %v162_v52 }
  0x2e   :  { %148 = vmatpush.msra.mxu0 %v120_v30  ;;  %v97_v35 = vrot.slane %v96_v33, 2  ;;  %183 = vmatpush.msra.mxu1 %v161_v54 }
  0x30   :  { %149 = vmatpush.msra.mxu0 %v119_v32  ;;  %v98_v36 = vadd.f32 %v97_v35, %v96_v33  ;;  %184 = vmatpush.msra.mxu1 %v160_v56 }
  0x32   :  { %150 = vmatpush.msra.mxu0 %v118_v34  ;;  %v99_v37 = vrot.slane %v98_v36, 1  ;;  %185 = vmatpush.msra.mxu1 %v159_v59 }
  0x34   :  { %v100_v40 = vadd.f32 %v99_v37, %v98_v36  ;;  %186 = vmatpush.msra.mxu1 %v158_v3  ;;  %v221_v37 = vperm.slane %v437_v57, 4 }
  0x36   :  { %v101_v42 = vmul.f32 %v100_v40, %v433_v21  ;;  %187 = vmatpush.msra.mxu1 %v157_v4  ;;  %v223_v40 = vperm.slane %v437_v57, 5 }
  0x38   :  { %v102_v44 = vadd.f32 1e-05, %v101_v42  ;;  %188 = vmatpush.msra.mxu1 %v156_v5 }
  0x3a   :  { %256 = vrsqrt.f32 %v102_v44  ;;  %vm109_vm1 = vweird.f32 %v102_v44 }
  0x40   :  { %v257_v49 = vpop.eup %256 }
  0x41   :  { %v104_v51 = vmul.f32 %v257_v49, %v102_v44  ;;  %vm110_vm2 = vweird.f32 %v257_v49 }
  0x42   :  { %vm111_vm3 = vmor %vm109_vm1, %vm110_vm2 }
  0x43   :  { %v105_v53 = vmul.f32 %v257_v49, %v104_v51 }
  0x45   :  { %v106_v55 = vmul.f32 0.5, %v105_v53 }
  0x47   :  { %v107_v58 = vsub.f32 1.5, %v106_v55 }
  0x49   :  { %v108_v60 = vmul.f32 %v257_v49, %v107_v58 }
  0x4b   :  { %v112_v62 = vsel %vm111_vm3, %v257_v49, %v108_v60 }
  0x4c   :  { %v113_v63 = vmul.f32 %v112_v62, %v93_v27 }
  0x4e   :  { %v115_v1 = vmul.f32 %v114_v61, %v113_v63 }
  0x50   :  { %v117_v2 = vadd.f32 %v116_v0, %v115_v1 }
  0x52   :  { %151 = vmatmul.f32.vlgmr.msra.gmra.mxu0 %v117_v2 }
  0xcf   :  { %v152_v7 = vpop.f32.mrf.mxu0 }
  0xd0   :  { %v153_v8 = vadd.f32 %v152_v7, %v134_v6 }
  0xd2   :  { %v155_v9 = vmax.f32 %v153_v8, 0.0 }
  0xd4   :  { %189 = vmatmul.f32.vlgmr.msra.gmra.mxu1 %v155_v9 }
 0x151   :  { %v190_v11 = vpop.f32.mrf.mxu1 }
 0x152   :  { %v191_v12 = vadd.f32 %v190_v11, %v172_v10 }
 0x154   :  { %v193_v13 = vrot.slane %v191_v12, 4 }
 0x156   :  { %v194_v14 = vadd.f32 %v193_v13, %v191_v12 }
 0x158   :  { %v195_v15 = vrot.slane %v194_v14, 2 }
 0x15a   :  { %v196_v16 = vadd.f32 %v195_v15, %v194_v14 }
 0x15c   :  { %v197_v17 = vrot.slane %v196_v16, 1 }
 0x15e   :  { %v198_v18 = vadd.f32 %v197_v17, %v196_v16 }
 0x160   :  { %v199_v19 = vmul.f32 %v198_v18, %v433_v21 }
 0x162   :  { %v200_v20 = vsub.f32 %v191_v12, %v199_v19 }
 0x164   :  { %v201_v22 = vmul.f32 %v200_v20, %v200_v20 }
 0x166   :  { %v202_v23 = vrot.slane %v201_v22, 4 }
 0x168   :  { %v203_v24 = vadd.f32 %v202_v23, %v201_v22 }
 0x16a   :  { %v204_v25 = vrot.slane %v203_v24, 2 }
 0x16c   :  { %v205_v26 = vadd.f32 %v204_v25, %v203_v24 }
 0x16e   :  { %v206_v27 = vrot.slane %v205_v26, 1 }
 0x170   :  { %v207_v28 = vadd.f32 %v206_v27, %v205_v26 }
 0x172   :  { %v208_v29 = vmul.f32 %v207_v28, %v433_v21 }
 0x174   :  { %v209_v30 = vadd.f32 1e-05, %v208_v29 }
 0x176   :  { %258 = vrsqrt.f32 %v209_v30  ;;  %vm216_vm5 = vweird.f32 %v209_v30 }
 0x17c   :  { %v259_v31 = vpop.eup %258 }
 0x17d   :  { %v211_v32 = vmul.f32 %v259_v31, %v209_v30  ;;  %vm217_vm4 = vweird.f32 %v259_v31 }
 0x17e   :  { %vm218_vm6 = vmor %vm216_vm5, %vm217_vm4 }
 0x17f   :  { %v212_v33 = vmul.f32 %v259_v31, %v211_v32 }
 0x181   :  { %v213_v34 = vmul.f32 0.5, %v212_v33 }
 0x183   :  { %v214_v35 = vsub.f32 1.5, %v213_v34 }
 0x185   :  { %v215_v36 = vmul.f32 %v259_v31, %v214_v35 }
 0x187   :  { %v219_v38 = vsel %vm218_vm6, %v259_v31, %v215_v36 }
 0x188   :  { %v220_v39 = vmul.f32 %v219_v38, %v200_v20 }
 0x18a   :  { %v222_v41 = vmul.f32 %v221_v37, %v220_v39 }
 0x18c   :  { %v224_v21 = vadd.f32 %v223_v40, %v222_v41 }
 0x18e   :  { %v225_v42 = vadd.f32 %v224_v21, %v117_v2 }
 0x190   :  { %226 = vst [vmem:[#allocation10] sm:$0xff] %v225_v42 }
 0x191   :  { %237 = dma.vmem_to_hbm [thread:$0]  %s233_s3, 128, %s235_s11, [#allocation4]  }
 0x192   :  { %386 = dma.done.wait [#allocation4], 128  }
 0x193   :  { %387 = vsyncadd [#allocation4], 4294967168 }
 0x194   :  { %242 = vsyncpa [#allocation3], 1 }
 0x195   :  { %243 = vsyncpa [#allocation6], 1 }
 0x196   :  { %244 = vsyncpa [#allocation9], 1 }
 0x197   :  { %245 = vsyncpa [#allocation4], 1 }

</bundles_post_ra>
